<compile_context>
chip_gen: v7x
topology: tpu7x:2x2x1
jax: 0.10.0
libtpu: 0.0.40
codegen_flags: <defaults>
</compile_context>

<pallas_src>
import jax
import jax.numpy as jnp
from jax.experimental import pallas as pl
from jax.experimental.pallas import tpu as pltpu

INPUT_SIZE = 32
HIDDEN = 64
NUM_CLASSES = 10
OUT_PAD = 128  # lane-dense padded output width; real logits live in [:NUM_CLASSES]


def rnn_forward(x, w_ih, w_hh, b, w_out, b_out):
    """x: (B, T, INPUT_SIZE) float32, batch_first like PyTorch."""
    B, T, D = x.shape
    H = HIDDEN
    H4 = 4 * H

    # Wrapper-side layout plumbing only (no compute hoisting): time-major + flatten so
    # the kernel can do the input projection for all timesteps in a single matmul.
    x2d = jnp.transpose(x, (1, 0, 2)).reshape(T * B, D)          # row t*B + b

    # Pad the output projection to 128 lanes (zeros beyond NUM_CLASSES).
    w_out_p = jnp.zeros((H, OUT_PAD), jnp.float32).at[:, :NUM_CLASSES].set(w_out)
    b_out_p = jnp.zeros((1, OUT_PAD), jnp.float32).at[:, :NUM_CLASSES].set(b_out)

    def kernel(x_ref, wih_ref, whh_ref, b_ref, wout_ref, bout_ref, out_ref):
        # Prologue: x @ W_ih + b for every timestep in one MXU pass (off the serial chain).
        xg = (jnp.dot(x_ref[...], wih_ref[...], preferred_element_type=jnp.float32)
              + b_ref[...])                                       # (T*B, 4H)
        w_hh = whh_ref[...]                                       # hoisted weight load

        # Hoisted activation mask: tanh on the g-gate lanes [2H, 3H), sigmoid elsewhere.
        lane = jax.lax.broadcasted_iota(jnp.int32, (B, H4), dimension=1)
        g_mask = (lane >= 2 * H) & (lane < 3 * H)

        h = jnp.zeros((B, H), jnp.float32)
        c = jnp.zeros((B, H), jnp.float32)

        # Fully unrolled recurrence (T static & small). Only h @ W_hh is sequential.
        for t in range(T):
            gates = xg[t * B:(t + 1) * B, :] + jnp.dot(
                h, w_hh, preferred_element_type=jnp.float32)      # (B, 4H)
            acts = jnp.where(g_mask, jnp.tanh(gates), jax.nn.sigmoid(gates))
            i = acts[:, 0 * H:1 * H]
            f = acts[:, 1 * H:2 * H]
            g = acts[:, 2 * H:3 * H]
            o = acts[:, 3 * H:4 * H]
            c = f * c + i * g
            h = o * jnp.tanh(c)

        # Last timestep only: output Linear, written as a lane-dense 128-wide store.
        out_ref[...] = (jnp.dot(h, wout_ref[...], preferred_element_type=jnp.float32)
                        + bout_ref[...])

    out_pad = pl.pallas_call(
        kernel,
        out_shape=jax.ShapeDtypeStruct((B, OUT_PAD), jnp.float32),
        in_specs=[pl.BlockSpec(memory_space=pltpu.MemorySpace.VMEM)] * 6,
        out_specs=pl.BlockSpec(memory_space=pltpu.MemorySpace.VMEM),
    )(x2d, w_ih, w_hh, b, w_out_p, b_out_p)

    return out_pad[:, :NUM_CLASSES]


def rnn_reference(x, w_ih, w_hh, b, w_out, b_out):
    """Pure-JAX reference (lax.scan) matching PyTorch LSTM semantics."""
    B = x.shape[0]
    H = HIDDEN

    def step(carry, x_t):
        h, c = carry
        gates = x_t @ w_ih + h @ w_hh + b[0]
        i = jax.nn.sigmoid(gates[:, 0 * H:1 * H])
        f = jax.nn.sigmoid(gates[:, 1 * H:2 * H])
        g = jnp.tanh(gates[:, 2 * H:3 * H])
        o = jax.nn.sigmoid(gates[:, 3 * H:4 * H])
        c_new = f * c + i * g
        h_new = o * jnp.tanh(c_new)
        return (h_new, c_new), None

    h0 = jnp.zeros((B, H), jnp.float32)
    c0 = jnp.zeros((B, H), jnp.float32)
    (h_last, _), _ = jax.lax.scan(step, (h0, c0), jnp.transpose(x, (1, 0, 2)))
    return h_last @ w_out + b_out[0]


def init_params(key):
    """Deterministic synthetic params, PyTorch-style uniform(-1/sqrt(H), 1/sqrt(H))."""
    H, D = HIDDEN, INPUT_SIZE
    bound = 1.0 / jnp.sqrt(jnp.float32(H))
    ks = jax.random.split(key, 6)
    w_ih = jax.random.uniform(ks[0], (D, 4 * H), jnp.float32, -bound, bound)
    w_hh = jax.random.uniform(ks[1], (H, 4 * H), jnp.float32, -bound, bound)
    b_ih = jax.random.uniform(ks[2], (4 * H,), jnp.float32, -bound, bound)
    b_hh = jax.random.uniform(ks[3], (4 * H,), jnp.float32, -bound, bound)
    b = (b_ih + b_hh).reshape(1, 4 * H)
    w_out = jax.random.uniform(ks[4], (H, NUM_CLASSES), jnp.float32, -bound, bound)
    b_out = jax.random.uniform(ks[5], (NUM_CLASSES,), jnp.float32,
                               -bound, bound).reshape(1, NUM_CLASSES)
    return w_ih, w_hh, b, w_out, b_out


if __name__ == "__main__":
    key = jax.random.PRNGKey(0)
    k_x, k_p = jax.random.split(key)
    B, T = 2, 8
    x = jax.random.normal(k_x, (B, T, INPUT_SIZE), jnp.float32)
    params = init_params(k_p)

    out = rnn_forward(x, *params)
    out = jax.block_until_ready(out)

    ref = rnn_reference(x, *params)
    assert out.shape == (B, NUM_CLASSES)
    assert jnp.allclose(out, ref, atol=1e-4, rtol=1e-4), "mismatch vs reference"

    print("KERNEL_OK")
</pallas_src>

<mosaic_0001>
module attributes {stable_mosaic.version = 11 : i64} {
  func.func @kernel(%arg0: memref<16x32xf32, #tpu.memory_space<vmem>>, %arg1: memref<32x256xf32, #tpu.memory_space<vmem>>, %arg2: memref<64x256xf32, #tpu.memory_space<vmem>>, %arg3: memref<1x256xf32, #tpu.memory_space<vmem>>, %arg4: memref<64x128xf32, #tpu.memory_space<vmem>>, %arg5: memref<1x128xf32, #tpu.memory_space<vmem>>, %arg6: memref<2x128xf32, #tpu.memory_space<vmem>>) attributes {dimension_semantics = [], scalar_prefetch = 0 : i64, scratch_operands = 0 : i64, tpu.core_type = #tpu.core_type<tc>} {
    %c0 = arith.constant 0 : index
    %c0_0 = arith.constant 0 : index
    %0 = vector.load %arg0[%c0, %c0_0] : memref<16x32xf32, #tpu.memory_space<vmem>>, vector<16x32xf32>
    %c0_1 = arith.constant 0 : index
    %c0_2 = arith.constant 0 : index
    %1 = vector.load %arg1[%c0_1, %c0_2] : memref<32x256xf32, #tpu.memory_space<vmem>>, vector<32x256xf32>
    %cst = arith.constant dense<0.000000e+00> : vector<16x256xf32>
    %2 = tpu.matmul %0, %1, %cst {dimension_numbers = #tpu.dot_dimension_numbers<[1], [0], [0], [1], [0, 0, 1, 1], [], []>} : vector<16x32xf32>, vector<32x256xf32>, vector<16x256xf32> -> vector<16x256xf32>
    %c0_3 = arith.constant 0 : index
    %c0_4 = arith.constant 0 : index
    %3 = vector.load %arg3[%c0_3, %c0_4] : memref<1x256xf32, #tpu.memory_space<vmem>>, vector<1x256xf32>
    %4 = vector.broadcast %3 : vector<1x256xf32> to vector<16x256xf32>
    %5 = arith.addf %2, %4 : vector<16x256xf32>
    %c0_5 = arith.constant 0 : index
    %c0_6 = arith.constant 0 : index
    %6 = vector.load %arg2[%c0_5, %c0_6] : memref<64x256xf32, #tpu.memory_space<vmem>>, vector<64x256xf32>
    %7 = tpu.iota {dimensions = array<i32: 1>} : vector<2x256xi32>
    %c128_i32 = arith.constant 128 : i32
    %8 = vector.broadcast %c128_i32 : i32 to vector<2x256xi32>
    %9 = arith.cmpi sge, %7, %8 : vector<2x256xi32>
    %c192_i32 = arith.constant 192 : i32
    %10 = vector.broadcast %c192_i32 : i32 to vector<2x256xi32>
    %11 = arith.cmpi slt, %7, %10 : vector<2x256xi32>
    %12 = arith.andi %9, %11 : vector<2x256xi1>
    %cst_7 = arith.constant 0.000000e+00 : f32
    %13 = vector.broadcast %cst_7 : f32 to vector<2x64xf32>
    %cst_8 = arith.constant 0.000000e+00 : f32
    %14 = vector.broadcast %cst_8 : f32 to vector<2x64xf32>
    %15 = vector.extract_strided_slice %5 {offsets = [0, 0], sizes = [2, 256], strides = [1, 1]} : vector<16x256xf32> to vector<2x256xf32>
    %cst_9 = arith.constant dense<0.000000e+00> : vector<2x256xf32>
    %16 = tpu.matmul %13, %6, %cst_9 {dimension_numbers = #tpu.dot_dimension_numbers<[1], [0], [0], [1], [0, 0, 1, 1], [], []>} : vector<2x64xf32>, vector<64x256xf32>, vector<2x256xf32> -> vector<2x256xf32>
    %17 = arith.addf %15, %16 : vector<2x256xf32>
    %18 = math.tanh %17 : vector<2x256xf32>
    %19 = arith.negf %17 : vector<2x256xf32>
    %20 = math.exp %19 : vector<2x256xf32>
    %cst_10 = arith.constant 1.000000e+00 : f32
    %21 = vector.broadcast %cst_10 : f32 to vector<2x256xf32>
    %22 = arith.addf %21, %20 : vector<2x256xf32>
    %23 = arith.divf %21, %22 : vector<2x256xf32>
    %24 = arith.select %12, %18, %23 : vector<2x256xi1>, vector<2x256xf32>
    %25 = vector.extract_strided_slice %24 {offsets = [0, 0], sizes = [2, 64], strides = [1, 1]} : vector<2x256xf32> to vector<2x64xf32>
    %26 = vector.extract_strided_slice %24 {offsets = [0, 64], sizes = [2, 64], strides = [1, 1]} : vector<2x256xf32> to vector<2x64xf32>
    %27 = vector.extract_strided_slice %24 {offsets = [0, 128], sizes = [2, 64], strides = [1, 1]} : vector<2x256xf32> to vector<2x64xf32>
    %28 = vector.extract_strided_slice %24 {offsets = [0, 192], sizes = [2, 64], strides = [1, 1]} : vector<2x256xf32> to vector<2x64xf32>
    %29 = arith.mulf %26, %14 : vector<2x64xf32>
    %30 = arith.mulf %25, %27 : vector<2x64xf32>
    %31 = arith.addf %29, %30 : vector<2x64xf32>
    %32 = math.tanh %31 : vector<2x64xf32>
    %33 = arith.mulf %28, %32 : vector<2x64xf32>
    %34 = vector.extract_strided_slice %5 {offsets = [2, 0], sizes = [2, 256], strides = [1, 1]} : vector<16x256xf32> to vector<2x256xf32>
    %cst_11 = arith.constant dense<0.000000e+00> : vector<2x256xf32>
    %35 = tpu.matmul %33, %6, %cst_11 {dimension_numbers = #tpu.dot_dimension_numbers<[1], [0], [0], [1], [0, 0, 1, 1], [], []>} : vector<2x64xf32>, vector<64x256xf32>, vector<2x256xf32> -> vector<2x256xf32>
    %36 = arith.addf %34, %35 : vector<2x256xf32>
    %37 = math.tanh %36 : vector<2x256xf32>
    %38 = arith.negf %36 : vector<2x256xf32>
    %39 = math.exp %38 : vector<2x256xf32>
    %cst_12 = arith.constant 1.000000e+00 : f32
    %40 = vector.broadcast %cst_12 : f32 to vector<2x256xf32>
    %41 = arith.addf %40, %39 : vector<2x256xf32>
    %42 = arith.divf %40, %41 : vector<2x256xf32>
    %43 = arith.select %12, %37, %42 : vector<2x256xi1>, vector<2x256xf32>
    %44 = vector.extract_strided_slice %43 {offsets = [0, 0], sizes = [2, 64], strides = [1, 1]} : vector<2x256xf32> to vector<2x64xf32>
    %45 = vector.extract_strided_slice %43 {offsets = [0, 64], sizes = [2, 64], strides = [1, 1]} : vector<2x256xf32> to vector<2x64xf32>
    %46 = vector.extract_strided_slice %43 {offsets = [0, 128], sizes = [2, 64], strides = [1, 1]} : vector<2x256xf32> to vector<2x64xf32>
    %47 = vector.extract_strided_slice %43 {offsets = [0, 192], sizes = [2, 64], strides = [1, 1]} : vector<2x256xf32> to vector<2x64xf32>
    %48 = arith.mulf %45, %31 : vector<2x64xf32>
    %49 = arith.mulf %44, %46 : vector<2x64xf32>
    %50 = arith.addf %48, %49 : vector<2x64xf32>
    %51 = math.tanh %50 : vector<2x64xf32>
    %52 = arith.mulf %47, %51 : vector<2x64xf32>
    %53 = vector.extract_strided_slice %5 {offsets = [4, 0], sizes = [2, 256], strides = [1, 1]} : vector<16x256xf32> to vector<2x256xf32>
    %cst_13 = arith.constant dense<0.000000e+00> : vector<2x256xf32>
    %54 = tpu.matmul %52, %6, %cst_13 {dimension_numbers = #tpu.dot_dimension_numbers<[1], [0], [0], [1], [0, 0, 1, 1], [], []>} : vector<2x64xf32>, vector<64x256xf32>, vector<2x256xf32> -> vector<2x256xf32>
    %55 = arith.addf %53, %54 : vector<2x256xf32>
    %56 = math.tanh %55 : vector<2x256xf32>
    %57 = arith.negf %55 : vector<2x256xf32>
    %58 = math.exp %57 : vector<2x256xf32>
    %cst_14 = arith.constant 1.000000e+00 : f32
    %59 = vector.broadcast %cst_14 : f32 to vector<2x256xf32>
    %60 = arith.addf %59, %58 : vector<2x256xf32>
    %61 = arith.divf %59, %60 : vector<2x256xf32>
    %62 = arith.select %12, %56, %61 : vector<2x256xi1>, vector<2x256xf32>
    %63 = vector.extract_strided_slice %62 {offsets = [0, 0], sizes = [2, 64], strides = [1, 1]} : vector<2x256xf32> to vector<2x64xf32>
    %64 = vector.extract_strided_slice %62 {offsets = [0, 64], sizes = [2, 64], strides = [1, 1]} : vector<2x256xf32> to vector<2x64xf32>
    %65 = vector.extract_strided_slice %62 {offsets = [0, 128], sizes = [2, 64], strides = [1, 1]} : vector<2x256xf32> to vector<2x64xf32>
    %66 = vector.extract_strided_slice %62 {offsets = [0, 192], sizes = [2, 64], strides = [1, 1]} : vector<2x256xf32> to vector<2x64xf32>
    %67 = arith.mulf %64, %50 : vector<2x64xf32>
    %68 = arith.mulf %63, %65 : vector<2x64xf32>
    %69 = arith.addf %67, %68 : vector<2x64xf32>
    %70 = math.tanh %69 : vector<2x64xf32>
    %71 = arith.mulf %66, %70 : vector<2x64xf32>
    %72 = vector.extract_strided_slice %5 {offsets = [6, 0], sizes = [2, 256], strides = [1, 1]} : vector<16x256xf32> to vector<2x256xf32>
    %cst_15 = arith.constant dense<0.000000e+00> : vector<2x256xf32>
    %73 = tpu.matmul %71, %6, %cst_15 {dimension_numbers = #tpu.dot_dimension_numbers<[1], [0], [0], [1], [0, 0, 1, 1], [], []>} : vector<2x64xf32>, vector<64x256xf32>, vector<2x256xf32> -> vector<2x256xf32>
    %74 = arith.addf %72, %73 : vector<2x256xf32>
    %75 = math.tanh %74 : vector<2x256xf32>
    %76 = arith.negf %74 : vector<2x256xf32>
    %77 = math.exp %76 : vector<2x256xf32>
    %cst_16 = arith.constant 1.000000e+00 : f32
    %78 = vector.broadcast %cst_16 : f32 to vector<2x256xf32>
    %79 = arith.addf %78, %77 : vector<2x256xf32>
    %80 = arith.divf %78, %79 : vector<2x256xf32>
    %81 = arith.select %12, %75, %80 : vector<2x256xi1>, vector<2x256xf32>
    %82 = vector.extract_strided_slice %81 {offsets = [0, 0], sizes = [2, 64], strides = [1, 1]} : vector<2x256xf32> to vector<2x64xf32>
    %83 = vector.extract_strided_slice %81 {offsets = [0, 64], sizes = [2, 64], strides = [1, 1]} : vector<2x256xf32> to vector<2x64xf32>
    %84 = vector.extract_strided_slice %81 {offsets = [0, 128], sizes = [2, 64], strides = [1, 1]} : vector<2x256xf32> to vector<2x64xf32>
    %85 = vector.extract_strided_slice %81 {offsets = [0, 192], sizes = [2, 64], strides = [1, 1]} : vector<2x256xf32> to vector<2x64xf32>
    %86 = arith.mulf %83, %69 : vector<2x64xf32>
    %87 = arith.mulf %82, %84 : vector<2x64xf32>
    %88 = arith.addf %86, %87 : vector<2x64xf32>
    %89 = math.tanh %88 : vector<2x64xf32>
    %90 = arith.mulf %85, %89 : vector<2x64xf32>
    %91 = vector.extract_strided_slice %5 {offsets = [8, 0], sizes = [2, 256], strides = [1, 1]} : vector<16x256xf32> to vector<2x256xf32>
    %cst_17 = arith.constant dense<0.000000e+00> : vector<2x256xf32>
    %92 = tpu.matmul %90, %6, %cst_17 {dimension_numbers = #tpu.dot_dimension_numbers<[1], [0], [0], [1], [0, 0, 1, 1], [], []>} : vector<2x64xf32>, vector<64x256xf32>, vector<2x256xf32> -> vector<2x256xf32>
    %93 = arith.addf %91, %92 : vector<2x256xf32>
    %94 = math.tanh %93 : vector<2x256xf32>
    %95 = arith.negf %93 : vector<2x256xf32>
    %96 = math.exp %95 : vector<2x256xf32>
    %cst_18 = arith.constant 1.000000e+00 : f32
    %97 = vector.broadcast %cst_18 : f32 to vector<2x256xf32>
    %98 = arith.addf %97, %96 : vector<2x256xf32>
    %99 = arith.divf %97, %98 : vector<2x256xf32>
    %100 = arith.select %12, %94, %99 : vector<2x256xi1>, vector<2x256xf32>
    %101 = vector.extract_strided_slice %100 {offsets = [0, 0], sizes = [2, 64], strides = [1, 1]} : vector<2x256xf32> to vector<2x64xf32>
    %102 = vector.extract_strided_slice %100 {offsets = [0, 64], sizes = [2, 64], strides = [1, 1]} : vector<2x256xf32> to vector<2x64xf32>
    %103 = vector.extract_strided_slice %100 {offsets = [0, 128], sizes = [2, 64], strides = [1, 1]} : vector<2x256xf32> to vector<2x64xf32>
    %104 = vector.extract_strided_slice %100 {offsets = [0, 192], sizes = [2, 64], strides = [1, 1]} : vector<2x256xf32> to vector<2x64xf32>
    %105 = arith.mulf %102, %88 : vector<2x64xf32>
    %106 = arith.mulf %101, %103 : vector<2x64xf32>
    %107 = arith.addf %105, %106 : vector<2x64xf32>
    %108 = math.tanh %107 : vector<2x64xf32>
    %109 = arith.mulf %104, %108 : vector<2x64xf32>
    %110 = vector.extract_strided_slice %5 {offsets = [10, 0], sizes = [2, 256], strides = [1, 1]} : vector<16x256xf32> to vector<2x256xf32>
    %cst_19 = arith.constant dense<0.000000e+00> : vector<2x256xf32>
    %111 = tpu.matmul %109, %6, %cst_19 {dimension_numbers = #tpu.dot_dimension_numbers<[1], [0], [0], [1], [0, 0, 1, 1], [], []>} : vector<2x64xf32>, vector<64x256xf32>, vector<2x256xf32> -> vector<2x256xf32>
    %112 = arith.addf %110, %111 : vector<2x256xf32>
    %113 = math.tanh %112 : vector<2x256xf32>
    %114 = arith.negf %112 : vector<2x256xf32>
    %115 = math.exp %114 : vector<2x256xf32>
    %cst_20 = arith.constant 1.000000e+00 : f32
    %116 = vector.broadcast %cst_20 : f32 to vector<2x256xf32>
    %117 = arith.addf %116, %115 : vector<2x256xf32>
    %118 = arith.divf %116, %117 : vector<2x256xf32>
    %119 = arith.select %12, %113, %118 : vector<2x256xi1>, vector<2x256xf32>
    %120 = vector.extract_strided_slice %119 {offsets = [0, 0], sizes = [2, 64], strides = [1, 1]} : vector<2x256xf32> to vector<2x64xf32>
    %121 = vector.extract_strided_slice %119 {offsets = [0, 64], sizes = [2, 64], strides = [1, 1]} : vector<2x256xf32> to vector<2x64xf32>
    %122 = vector.extract_strided_slice %119 {offsets = [0, 128], sizes = [2, 64], strides = [1, 1]} : vector<2x256xf32> to vector<2x64xf32>
    %123 = vector.extract_strided_slice %119 {offsets = [0, 192], sizes = [2, 64], strides = [1, 1]} : vector<2x256xf32> to vector<2x64xf32>
    %124 = arith.mulf %121, %107 : vector<2x64xf32>
    %125 = arith.mulf %120, %122 : vector<2x64xf32>
    %126 = arith.addf %124, %125 : vector<2x64xf32>
    %127 = math.tanh %126 : vector<2x64xf32>
    %128 = arith.mulf %123, %127 : vector<2x64xf32>
    %129 = vector.extract_strided_slice %5 {offsets = [12, 0], sizes = [2, 256], strides = [1, 1]} : vector<16x256xf32> to vector<2x256xf32>
    %cst_21 = arith.constant dense<0.000000e+00> : vector<2x256xf32>
    %130 = tpu.matmul %128, %6, %cst_21 {dimension_numbers = #tpu.dot_dimension_numbers<[1], [0], [0], [1], [0, 0, 1, 1], [], []>} : vector<2x64xf32>, vector<64x256xf32>, vector<2x256xf32> -> vector<2x256xf32>
    %131 = arith.addf %129, %130 : vector<2x256xf32>
    %132 = math.tanh %131 : vector<2x256xf32>
    %133 = arith.negf %131 : vector<2x256xf32>
    %134 = math.exp %133 : vector<2x256xf32>
    %cst_22 = arith.constant 1.000000e+00 : f32
    %135 = vector.broadcast %cst_22 : f32 to vector<2x256xf32>
    %136 = arith.addf %135, %134 : vector<2x256xf32>
    %137 = arith.divf %135, %136 : vector<2x256xf32>
    %138 = arith.select %12, %132, %137 : vector<2x256xi1>, vector<2x256xf32>
    %139 = vector.extract_strided_slice %138 {offsets = [0, 0], sizes = [2, 64], strides = [1, 1]} : vector<2x256xf32> to vector<2x64xf32>
    %140 = vector.extract_strided_slice %138 {offsets = [0, 64], sizes = [2, 64], strides = [1, 1]} : vector<2x256xf32> to vector<2x64xf32>
    %141 = vector.extract_strided_slice %138 {offsets = [0, 128], sizes = [2, 64], strides = [1, 1]} : vector<2x256xf32> to vector<2x64xf32>
    %142 = vector.extract_strided_slice %138 {offsets = [0, 192], sizes = [2, 64], strides = [1, 1]} : vector<2x256xf32> to vector<2x64xf32>
    %143 = arith.mulf %140, %126 : vector<2x64xf32>
    %144 = arith.mulf %139, %141 : vector<2x64xf32>
    %145 = arith.addf %143, %144 : vector<2x64xf32>
    %146 = math.tanh %145 : vector<2x64xf32>
    %147 = arith.mulf %142, %146 : vector<2x64xf32>
    %148 = vector.extract_strided_slice %5 {offsets = [14, 0], sizes = [2, 256], strides = [1, 1]} : vector<16x256xf32> to vector<2x256xf32>
    %cst_23 = arith.constant dense<0.000000e+00> : vector<2x256xf32>
    %149 = tpu.matmul %147, %6, %cst_23 {dimension_numbers = #tpu.dot_dimension_numbers<[1], [0], [0], [1], [0, 0, 1, 1], [], []>} : vector<2x64xf32>, vector<64x256xf32>, vector<2x256xf32> -> vector<2x256xf32>
    %150 = arith.addf %148, %149 : vector<2x256xf32>
    %151 = math.tanh %150 : vector<2x256xf32>
    %152 = arith.negf %150 : vector<2x256xf32>
    %153 = math.exp %152 : vector<2x256xf32>
    %cst_24 = arith.constant 1.000000e+00 : f32
    %154 = vector.broadcast %cst_24 : f32 to vector<2x256xf32>
    %155 = arith.addf %154, %153 : vector<2x256xf32>
    %156 = arith.divf %154, %155 : vector<2x256xf32>
    %157 = arith.select %12, %151, %156 : vector<2x256xi1>, vector<2x256xf32>
    %158 = vector.extract_strided_slice %157 {offsets = [0, 0], sizes = [2, 64], strides = [1, 1]} : vector<2x256xf32> to vector<2x64xf32>
    %159 = vector.extract_strided_slice %157 {offsets = [0, 64], sizes = [2, 64], strides = [1, 1]} : vector<2x256xf32> to vector<2x64xf32>
    %160 = vector.extract_strided_slice %157 {offsets = [0, 128], sizes = [2, 64], strides = [1, 1]} : vector<2x256xf32> to vector<2x64xf32>
    %161 = vector.extract_strided_slice %157 {offsets = [0, 192], sizes = [2, 64], strides = [1, 1]} : vector<2x256xf32> to vector<2x64xf32>
    %162 = arith.mulf %159, %145 : vector<2x64xf32>
    %163 = arith.mulf %158, %160 : vector<2x64xf32>
    %164 = arith.addf %162, %163 : vector<2x64xf32>
    %165 = math.tanh %164 : vector<2x64xf32>
    %166 = arith.mulf %161, %165 : vector<2x64xf32>
    %c0_25 = arith.constant 0 : index
    %c0_26 = arith.constant 0 : index
    %167 = vector.load %arg4[%c0_25, %c0_26] : memref<64x128xf32, #tpu.memory_space<vmem>>, vector<64x128xf32>
    %cst_27 = arith.constant dense<0.000000e+00> : vector<2x128xf32>
    %168 = tpu.matmul %166, %167, %cst_27 {dimension_numbers = #tpu.dot_dimension_numbers<[1], [0], [0], [1], [0, 0, 1, 1], [], []>} : vector<2x64xf32>, vector<64x128xf32>, vector<2x128xf32> -> vector<2x128xf32>
    %c0_28 = arith.constant 0 : index
    %c0_29 = arith.constant 0 : index
    %169 = vector.load %arg5[%c0_28, %c0_29] : memref<1x128xf32, #tpu.memory_space<vmem>>, vector<1x128xf32>
    %170 = vector.broadcast %169 : vector<1x128xf32> to vector<2x128xf32>
    %171 = arith.addf %168, %170 : vector<2x128xf32>
    %c0_30 = arith.constant 0 : index
    %c0_31 = arith.constant 0 : index
    %172 = vector.load %arg6[%c0_30, %c0_31] : memref<2x128xf32, #tpu.memory_space<vmem>>, vector<2x128xf32>
    tpu.vector_store %arg6[%c0_30, %c0_31], %171 {strides = array<i32>} : memref<2x128xf32, #tpu.memory_space<vmem>>, vector<2x128xf32>,
    return
  }
}

</mosaic_0001>

<bundles_post_ra>
// kernel: tpu_custom_call.1
= control target key start
LH: loop header
LB: loop body
LE: loop exit
PB: predicated region body
PF: predicated region fallthrough
CT: control target
= control target key end

     0   :  { %11 = vsyncpa [#allocation3], 0  ;;  %s1942_s0 = inlined_call_operand.hbm [shape: f32[16,32], index: 0, kind: input, shape index: {}]   ;;  %s1943_s1 = inlined_call_operand.hbm [shape: f32[32,256], index: 1, kind: input, shape index: {}]   ;;  %s1944_s2 = inlined_call_operand.hbm [shape: f32[64,256], index: 2, kind: input, shape index: {}]   ;;  %s1945_s3 = inlined_call_operand.vmem [shape: f32[1,256], index: 3, kind: input, shape index: {}]   ;;  %s1946_s4 = inlined_call_operand.hbm [shape: f32[64,128], index: 4, kind: input, shape index: {}]   ;;  %s1947_s5 = inlined_call_operand.vmem [shape: f32[1,128], index: 5, kind: input, shape index: {}]   ;;  %s1948_s6 = inlined_call_operand.hbm [shape: f32[2,128], index: 6, kind: output, shape index: {}]  }
   0x1   :  { %12 = vsyncpa [#allocation6], 0 }
   0x2   :  { %13 = vsyncpa [#allocation9], 0 }
   0x3   :  { %14 = vsyncpa [#allocation4], 0  ;;  %s1634_s21 = smov [#allocation5]   ;;  %s1516_s25 = scalar_lea.hbm %s1943_s1, 1024 }
   0x4   :  { %s32_s22 = sshll.u32 %s1634_s21, 4  ;;  %p1517_p0 = scmp.ne.s32.totalorder %s1943_s1, %s1516_s25  ;;  %s33_s22 = int_to_ptr.vmem [resolvable:$true] %s32_s22 }
   0x5   :  { %p1520_p1 = scmp.lt.u32.totalorder %s1516_s25, %s1943_s1 }
   0x7   :  { %p1522_p2 = pnand %p1520_p1, %p1517_p0 }
   0x9   :  { %1525 = shalt.err (!%p1522_p2)
}
   0xa   :  { %s1526_s30 = scalar_lea.vmem %s33_s22, 1024  ;;  %p1531_p4 = scmp.lt.s32.totalorder %s33_s22, %s33_s22 }
   0xb   :  { %p1527_p3 = scmp.ne.s32.totalorder %s33_s22, %s1526_s30  ;;  %p1532_p5 = scmp.lt.s32.totalorder %s1526_s30, %s1526_s30 }
   0xd   :  { %p1533_p6 = por %p1532_p5, %p1531_p4 }
   0xf   :  { %p1534_p7 = pnand %p1533_p6, %p1527_p3 }
  0x11   :  { %1537 = shalt.err (!%p1534_p7)
}
  0x12   :  { %s1635_s7 = smov 256   ;;  %s1636_s8 = smov 16  }
  0x13   :  { %38 = dma.hbm_to_vmem [thread:$0]  %s1943_s1, 1024, %s33_s22, [#allocation6], %s1635_s7, %s1635_s7, %s1636_s8  }
  0x14   :  { %s1637_s11 = smov [#allocation2]   ;;  %s1538_s15 = scalar_lea.hbm %s1942_s0, 256 }
  0x15   :  { %s20_s12 = sshll.u32 %s1637_s11, 4  ;;  %p1539_p8 = scmp.ne.s32.totalorder %s1942_s0, %s1538_s15  ;;  %s21_s12 = int_to_ptr.vmem [resolvable:$true] %s20_s12 }
  0x16   :  { %p1542_p9 = scmp.lt.u32.totalorder %s1538_s15, %s1942_s0 }
  0x18   :  { %p1544_p10 = pnand %p1542_p9, %p1539_p8 }
  0x1a   :  { %1547 = shalt.err (!%p1544_p10)
}
  0x1b   :  { %s1548_s20 = scalar_lea.vmem %s21_s12, 256  ;;  %p1553_p12 = scmp.lt.s32.totalorder %s21_s12, %s21_s12 }
  0x1c   :  { %p1549_p11 = scmp.ne.s32.totalorder %s21_s12, %s1548_s20  ;;  %p1554_p13 = scmp.lt.s32.totalorder %s1548_s20, %s1548_s20 }
  0x1e   :  { %p1555_p0 = por %p1554_p13, %p1553_p12 }
  0x20   :  { %p1556_p1 = pnand %p1555_p0, %p1549_p11 }
  0x22   :  { %1559 = shalt.err (!%p1556_p1)
}
  0x23   :  { %s1638_s1 = smov 128   ;;  %s1639_s21 = smov 8  }
  0x24   :  { %26 = dma.hbm_to_vmem [thread:$0]  %s1942_s0, 256, %s21_s12, [#allocation3], %s1638_s1, %s1638_s1, %s1639_s21  }
  0x25   :  { %s1640_s24 = smov [#allocation7]   ;;  %s1641_s26 = smov [#allocation8]  }
  0x26   :  { %s44_s25 = sshll.u32 %s1640_s24, 4  ;;  %s58_s27 = sshll.u32 %s1641_s26, 4  ;;  %s45_s25 = int_to_ptr.vmem [resolvable:$true] %s44_s25  ;;  %s1712_s27 = int_to_ptr.vmem [resolvable:$true] %s58_s27 }
  0x27   :  { %s1560_s30 = scalar_lea.hbm %s1944_s2, 2048 }
  0x28   :  { %p1561_p2 = scmp.ne.s32.totalorder %s1944_s2, %s1560_s30  ;;  %p1564_p3 = scmp.lt.u32.totalorder %s1560_s30, %s1944_s2 }
  0x2a   :  { %p1566_p4 = pnand %p1564_p3, %p1561_p2 }
  0x2c   :  { %1569 = shalt.err (!%p1566_p4)
}
  0x2d   :  { %s1570_s0 = scalar_lea.vmem %s45_s25, 2048  ;;  %p1575_p6 = scmp.lt.s32.totalorder %s45_s25, %s45_s25 }
  0x2e   :  { %p1571_p5 = scmp.ne.s32.totalorder %s45_s25, %s1570_s0  ;;  %p1576_p7 = scmp.lt.s32.totalorder %s1570_s0, %s1570_s0 }
  0x30   :  { %p1577_p8 = por %p1576_p7, %p1575_p6 }
  0x32   :  { %p1578_p9 = pnand %p1577_p8, %p1571_p5 }
  0x34   :  { %1581 = shalt.err (!%p1578_p9)
}
  0x35   :  { %50 = dma.hbm_to_vmem [thread:$0]  %s1944_s2, 2048, %s45_s25, [#allocation6], %s1635_s7, %s1635_s7, %s1636_s8  }
  0x36   :  { %s1582_s17 = scalar_lea.hbm %s1946_s4, 1024 }
  0x37   :  { %p1583_p10 = scmp.ne.s32.totalorder %s1946_s4, %s1582_s17  ;;  %p1586_p11 = scmp.lt.u32.totalorder %s1582_s17, %s1946_s4 }
  0x39   :  { %p1588_p12 = pnand %p1586_p11, %p1583_p10 }
  0x3b   :  { %1591 = shalt.err (!%p1588_p12)
}
  0x3c   :  { %s1592_s23 = scalar_lea.vmem %s1712_s27, 1024  ;;  %p1597_p0 = scmp.lt.s32.totalorder %s1712_s27, %s1712_s27 }
  0x3d   :  { %p1593_p13 = scmp.ne.s32.totalorder %s1712_s27, %s1592_s23  ;;  %p1598_p1 = scmp.lt.s32.totalorder %s1592_s23, %s1592_s23 }
  0x3f   :  { %p1599_p2 = por %p1598_p1, %p1597_p0 }
  0x41   :  { %p1600_p3 = pnand %p1599_p2, %p1593_p13 }
  0x43   :  { %1603 = shalt.err (!%p1600_p3)
}
  0x44   :  { %64 = dma.hbm_to_vmem [thread:$0]  %s1946_s4, 1024, %s1712_s27, [#allocation9], %s1638_s1, %s1638_s1, %s1639_s21  }
  0x45   :  { %1626 = dma.done.wait [#allocation3], 256  }
  0x46   :  { %1627 = vsyncadd [#allocation3], 4294967040 }
  0x47   :  { %1628 = dma.done.wait [#allocation6], 3072  }
  0x48   :  { %1629 = vsyncadd [#allocation6], 4294964224 }
  0x49   :  { %1630 = dma.done.wait [#allocation9], 1024  }
  0x4a   :  { %1631 = vsyncadd [#allocation9], 4294966272  ;;  %v1642_v0 = vmov 0.0   ;;  %v186_v1 = vld [vmem:[#allocation7 + $0x8] sm:$0xff]  ;;  %v188_v2 = vld [vmem:[#allocation7 + $0x18] sm:$0xff]  ;;  %vm101_vm0 = vcmask 261120   ;;  %v91_v38 = vlaneseq }
  0x4b   :  { %172 = vmatprep.mubr.f32.mxu0 %v1642_v0  ;;  %278 = vmatprep.mubr.f32.mxu1 %v1642_v0  ;;  %v185_v3 = vld [vmem:[#allocation7] sm:$0xff]  ;;  %v1751_v4 = vpack.c.bf16 %v188_v2, %v186_v1  ;;  %v187_v5 = vld [vmem:[#allocation7 + $0x10] sm:$0xff]  ;;  %v190_v6 = vld [vmem:[#allocation7 + $0x28] sm:$0xff]  ;;  %vm210_vm2 = vcmask 523264   ;;  %vm1645_vm3 = vmmov 0   ;;  %s1646_s24 = smov [#allocation10]  }
  0x4c   :  { %v192_v7 = vld [vmem:[#allocation7 + $0x38] sm:$0xff]  ;;  %v1753_v8 = vpack.c.bf16 %v187_v5, %v185_v3  ;;  %v82_v10 = vld [vmem:[#allocation5 + $0x8] sm:$0xff]  ;;  %v189_v12 = vld [vmem:[#allocation7 + $0x20] sm:$0xff]  ;;  %v92_v39 = vshrl.u32 %v91_v38, 7  ;;  %v202_v59 = vand.u32 127, %v91_v38  ;;  %s1193_s25 = sshll.u32 %s1646_s24, 4  ;;  %s1194_s25 = int_to_ptr.vmem [resolvable:$true] %s1193_s25 }
  0x4d   :  { %v1755_v9 = vpack.c.bf16 %v192_v7, %v190_v6  ;;  %v84_v11 = vld [vmem:[#allocation5 + $0x18] sm:$0xff]  ;;  %1268 = vmatprep.subr.bf16.mxu1 %v1751_v4  ;;  %v191_v14 = vld [vmem:[#allocation7 + $0x30] sm:$0xff]  ;;  %v81_v15 = vld [vmem:[#allocation5] sm:$0xff]  ;;  %s1604_s26 = scalar_lea.vmem %s1194_s25, 32  ;;  %p1609_p5 = scmp.lt.s32.totalorder %s1194_s25, %s1194_s25 }
  0x4e   :  { %v1259_v13 = vpack.c.bf16 %v84_v11, %v82_v10  ;;  %v83_v16 = vld [vmem:[#allocation5 + $0x10] sm:$0xff]  ;;  %1270 = vmatpush1.bf16.msra.mxu1 %v1753_v8  ;;  %v1759_v17 = vpack.c.bf16 %v191_v14, %v189_v12  ;;  %v194_v19 = vld [vmem:[#allocation7 + $0x48] sm:$0xff]  ;;  %v196_v20 = vld [vmem:[#allocation7 + $0x58] sm:$0xff]  ;;  %v93_v40 = vsub.s32 0, %v92_v39  ;;  %v97_v42 = vsub.s32 1, %v92_v39  ;;  %p1605_p4 = scmp.ne.s32.totalorder %s1194_s25, %s1604_s26  ;;  %p1610_p6 = scmp.lt.s32.totalorder %s1604_s26, %s1604_s26 }
  0x4f   :  { %v1261_v18 = vpack.c.bf16 %v83_v16, %v81_v15  ;;  %v86_v21 = vld [vmem:[#allocation5 + $0x28] sm:$0xff]  ;;  %1272 = vmatprep.subr.bf16.mxu1 %v1755_v9  ;;  %v1762_v22 = vpack.c.bf16 %v196_v20, %v194_v19  ;;  %v88_v23 = vld [vmem:[#allocation5 + $0x38] sm:$0xff]  ;;  %v193_v24 = vld [vmem:[#allocation7 + $0x40] sm:$0xff]  ;;  %v1812_v60 = vadd.s32 128, %v202_v59 }
  0x50   :  { %1260 = vmatprep.subr.bf16.mxu0 %v1259_v13  ;;  %v195_v25 = vld [vmem:[#allocation7 + $0x50] sm:$0xff]  ;;  %v1263_v26 = vpack.c.bf16 %v88_v23, %v86_v21  ;;  %v85_v27 = vld [vmem:[#allocation5 + $0x20] sm:$0xff]  ;;  %v198_v29 = vld [vmem:[#allocation7 + $0x68] sm:$0xff]  ;;  %p1611_p7 = por %p1610_p6, %p1609_p5 }
  0x51   :  { %1262 = vmatpush1.bf16.msra.mxu0 %v1261_v18  ;;  %v87_v28 = vld [vmem:[#allocation5 + $0x30] sm:$0xff]  ;;  %v200_v31 = vld [vmem:[#allocation7 + $0x78] sm:$0xff]  ;;  %v1765_v32 = vpack.c.bf16 %v195_v25, %v193_v24  ;;  %v197_v34 = vld [vmem:[#allocation7 + $0x60] sm:$0xff]  ;;  %vm207_vm1 = vcmp.lt.s32.totalorder %v1812_v60, 192 }
  0x52   :  { %v1265_v30 = vpack.c.bf16 %v87_v28, %v85_v27  ;;  %1274 = vmatpush1.bf16.msra.mxu1 %v1759_v17  ;;  %1264 = vmatprep.subr.bf16.mxu0 %v1263_v26  ;;  %v1768_v33 = vpack.c.bf16 %v200_v31, %v198_v29  ;;  %v199_v35 = vld [vmem:[#allocation7 + $0x70] sm:$0xff]  ;;  %v80_v3 = vld [vmem:[#allocation2 + $0x8] sm:$0xff]  ;;  %p1612_p8 = pnand %p1611_p7, %p1605_p4 }
  0x53   :  { %1276 = vmatprep.subr.bf16.mxu1 %v1762_v22  ;;  %v79_v36 = vld [vmem:[#allocation2] sm:$0xff]  ;;  %v1772_v37 = vpack.c.bf16 %v199_v35, %v197_v34 }
  0x54   :  { %v89_v41 = vld [vmem:[%s1945_s3] sm:$0x3]  ;;  %s1643_s3 = smov 64  }
  0x55   :  { %1266 = vmatpush1.bf16.msra.mxu0 %v1265_v30  ;;  %v1800_v43 = vrot.slane %v89_v41, %v93_v40  ;;  %v1802_v45 = vrot.slane %v89_v41, %v97_v42 }
  0x56   :  { %1284 = vmatprep.subr.bf16.mxu0 %v1751_v4  ;;  %1278 = vmatpush1.bf16.msra.mxu1 %v1765_v32 }
  0x57   :  { %1280 = vmatprep.subr.bf16.mxu1 %v1768_v33 }
  0x58   :  { %1204 = vmatmul.mubr.msk.f32.vlgmr.msra.gmra.mrb[0].mxu0 %vm101_vm0, %v79_v36 }
  0x59   :  { %1286 = vmatpush1.bf16.msra.mxu0 %v1753_v8  ;;  %178 = vmatprep.mubr.f32.mxu0 %v1642_v0 }
  0x5a   :  { %1288 = vmatprep.subr.bf16.mxu0 %v1755_v9  ;;  %1282 = vmatpush1.bf16.msra.mxu1 %v1772_v37 }
  0x5b   :  { %1300 = vmatprep.subr.bf16.mxu1 %v1751_v4 }
  0x5c   :  { %1205 = vmatmul.mubr.msk.f32.gmra.mrb[2].mxu0 %vm101_vm0, %v80_v3 }
  0x5d   :  { %1290 = vmatpush1.bf16.msra.mxu0 %v1759_v17  ;;  %279 = vmatmul.mubr.f32.vlgmr.msra.gmra.mrb[0].mxu1 %v1642_v0 }
  0x5e   :  { %1292 = vmatprep.subr.bf16.mxu0 %v1762_v22  ;;  %1302 = vmatpush1.bf16.msra.mxu1 %v1753_v8 }
  0x5f   :  { %494 = vmatprep.mubr.f32.mxu1 %v1642_v0  ;;  %1304 = vmatprep.subr.bf16.mxu1 %v1755_v9 }
  0x60   :  { %381 = vmatprep.mubr.f32.mxu0 %v1642_v0 }
  0x61   :  { %1294 = vmatpush1.bf16.msra.mxu0 %v1765_v32 }
  0x62   :  { %1296 = vmatprep.subr.bf16.mxu0 %v1768_v33  ;;  %1306 = vmatpush1.bf16.msra.mxu1 %v1759_v17 }
  0x63   :  { %1308 = vmatprep.subr.bf16.mxu1 %v1762_v22 }
  0x65   :  { %1298 = vmatpush1.bf16.msra.mxu0 %v1772_v37 }
  0x66   :  { %1316 = vmatprep.subr.bf16.mxu0 %v1751_v4  ;;  %1310 = vmatpush1.bf16.msra.mxu1 %v1765_v32 }
  0x67   :  { %1312 = vmatprep.subr.bf16.mxu1 %v1768_v33 }
  0x6a   :  { %1314 = vmatpush1.bf16.msra.mxu1 %v1772_v37 }
  0x6b   :  { %1332 = vmatprep.subr.bf16.mxu1 %v1751_v4 }
 0x12b   :  { %v174_v44 = vpop.f32.mrb[0].mxu0 }
 0x12c   :  { %v176_v46 = vpop.f32.mrb[1].mxu0  ;;  %v1805_v47 = vadd.f32 %v174_v44, %v1800_v43 }
 0x12d   :  { %v1808_v48 = vadd.f32 %v176_v46, %v1802_v45 }
 0x12f   :  { %v1821_v12 = vpop.f32.mrb[2].mxu0 }
 0x130   :  { %v280_v49 = vpop.f32.mrb[0].mxu1  ;;  %v1823_v13 = vpop.f32.mrb[3].mxu0 }
 0x131   :  { %v285_v50 = vadd.f32 %v280_v49, %v1805_v47  ;;  %v282_v51 = vpop.f32.mrb[1].mxu1 }
 0x132   :  { %v286_v52 = vadd.f32 %v282_v51, %v1808_v48 }
 0x133   :  { %v1206_v53 = vmul.f32 -1.442695, %v285_v50 }
 0x134   :  { %v1207_v54 = vmul.f32 -1.442695, %v286_v52 }
 0x135   :  { %1420 = vpow2.f32 %v1206_v53 }
 0x136   :  { %1422 = vpow2.f32 %v1207_v54 }
 0x137   :  { %1424 = vtanh.f32 %v286_v52 }
 0x13f   :  { %v1421_v55 = vpop.eup %1420 }
 0x140   :  { %v1423_v56 = vpop.eup %1422  ;;  %v295_v57 = vadd.f32 1.0, %v1421_v55 }
 0x141   :  { %v296_v58 = vadd.f32 1.0, %v1423_v56  ;;  %v1425_v61 = vpop.eup %1424 }
 0x143   :  { %1426 = vrcp.f32 %v296_v58 }
 0x144   :  { %1428 = vrcp.f32 %v295_v57 }
 0x14d   :  { %v1427_v62 = vpop.eup %1426 }
 0x14e   :  { %v1429_v63 = vpop.eup %1428  ;;  %v302_v1 = vsel %vm207_vm1, %v1425_v61, %v1427_v62 }
 0x14f   :  { %v304_v2 = vmul.f32 %v1429_v63, %v302_v1  ;;  %v303_v5 = vmul.f32 0.0, %v1429_v63 }
 0x151   :  { %306 = vrot.lane.b32.xlu0 %v304_v2, %s1643_s3 }
 0x1c3   :  { %v307_v6 = vpop.permute.xlu0 %306 }
 0x1c4   :  { %v309_v7 = vadd.f32 %v307_v6, %v303_v5 }
 0x1c6   :  { %1430 = vtanh.f32 %v309_v7  ;;  %v413_v30 = vrot.slane %v309_v7, 6 }
 0x1d0   :  { %v1431_v10 = vpop.eup %1430 }
 0x1d1   :  { %v311_v11 = vmul.f32 %v1431_v10, %v302_v1 }
 0x1d3   :  { %313 = vrot.lane.b32.xlu0 %v311_v11, %s1643_s3 }
 0x245   :  { %v314_v14 = vpop.permute.xlu0 %313 }
 0x246   :  { %1208 = vmatmul.mubr.msk.f32.vlgmr.msra.gmra.mrb[4].mxu0 %vm210_vm2, %v314_v14 }
 0x247   :  { %1318 = vmatpush1.bf16.msra.mxu0 %v1753_v8  ;;  %607 = vmatprep.mubr.f32.mxu0 %v1642_v0 }
 0x248   :  { %1320 = vmatprep.subr.bf16.mxu0 %v1755_v9 }
 0x24b   :  { %1322 = vmatpush1.bf16.msra.mxu0 %v1759_v17 }
 0x24c   :  { %1324 = vmatprep.subr.bf16.mxu0 %v1762_v22 }
 0x24f   :  { %1326 = vmatpush1.bf16.msra.mxu0 %v1765_v32 }
 0x250   :  { %1328 = vmatprep.subr.bf16.mxu0 %v1768_v33 }
 0x253   :  { %1330 = vmatpush1.bf16.msra.mxu0 %v1772_v37 }
 0x254   :  { %1348 = vmatprep.subr.bf16.mxu0 %v1751_v4 }
 0x319   :  { %v383_v15 = vpop.f32.mrb[4].mxu0 }
 0x31a   :  { %v390_v16 = vrot.slane %v383_v15, 6  ;;  %v385_v18 = vpop.f32.mrb[5].mxu0 }
 0x31b   :  { %v391_v19 = vrot.slane %v385_v18, 6 }
 0x31c   :  { %v394_v20 = vadd.f32 %v390_v16, %v1805_v47 }
 0x31d   :  { %v395_v21 = vadd.f32 %v391_v19, %v1808_v48 }
 0x31e   :  { %v1209_v23 = vmul.f32 -1.442695, %v394_v20 }
 0x31f   :  { %v1210_v24 = vmul.f32 -1.442695, %v395_v21 }
 0x320   :  { %1432 = vpow2.f32 %v1209_v23 }
 0x321   :  { %1434 = vpow2.f32 %v1210_v24 }
 0x322   :  { %1436 = vtanh.f32 %v395_v21 }
 0x32a   :  { %v1433_v25 = vpop.eup %1432 }
 0x32b   :  { %v1435_v26 = vpop.eup %1434  ;;  %v404_v27 = vadd.f32 1.0, %v1433_v25 }
 0x32c   :  { %v405_v28 = vadd.f32 1.0, %v1435_v26  ;;  %v1437_v29 = vpop.eup %1436 }
 0x32d   :  { %1438 = vrcp.f32 %v404_v27 }
 0x32e   :  { %1440 = vrcp.f32 %v405_v28 }
 0x337   :  { %v1439_v31 = vpop.eup %1438 }
 0x338   :  { %v1441_v34 = vpop.eup %1440  ;;  %v415_v35 = vmul.f32 %v1439_v31, %v413_v30 }
 0x339   :  { %v411_v36 = vsel %vm207_vm1, %v1437_v29, %v1441_v34 }
 0x33a   :  { %v416_v38 = vmul.f32 %v1439_v31, %v411_v36 }
 0x33c   :  { %418 = vrot.lane.b32.xlu1 %v416_v38, %s1643_s3 }
 0x3ae   :  { %v419_v39 = vpop.permute.xlu1 %418 }
 0x3af   :  { %v421_v40 = vadd.f32 %v419_v39, %v415_v35 }
 0x3b1   :  { %1442 = vtanh.f32 %v421_v40  ;;  %v526_v63 = vrot.slane %v421_v40, 6 }
 0x3bb   :  { %v1443_v41 = vpop.eup %1442 }
 0x3bc   :  { %v423_v42 = vmul.f32 %v1443_v41, %v411_v36 }
 0x3be   :  { %v425_v44 = vrot.slane %v423_v42, 2 }
 0x3c0   :  { %426 = vrot.lane.b32.xlu1 %v425_v44, %s1643_s3 }
 0x432   :  { %v427_v46 = vpop.permute.xlu1 %426 }
 0x433   :  { %1211 = vmatmul.mubr.msk.f32.vlgmr.msra.gmra.mrb[2].mxu1 %vm210_vm2, %v427_v46  ;;  %v1884_v46 = vadd.f32 %v1821_v12, %v1800_v43 }
 0x434   :  { %1334 = vmatpush1.bf16.msra.mxu1 %v1753_v8  ;;  %720 = vmatprep.mubr.f32.mxu1 %v1642_v0 }
 0x435   :  { %1336 = vmatprep.subr.bf16.mxu1 %v1755_v9 }
 0x438   :  { %1338 = vmatpush1.bf16.msra.mxu1 %v1759_v17 }
 0x439   :  { %1340 = vmatprep.subr.bf16.mxu1 %v1762_v22 }
 0x43c   :  { %1342 = vmatpush1.bf16.msra.mxu1 %v1765_v32 }
 0x43d   :  { %1344 = vmatprep.subr.bf16.mxu1 %v1768_v33 }
 0x440   :  { %1346 = vmatpush1.bf16.msra.mxu1 %v1772_v37 }
 0x441   :  { %1364 = vmatprep.subr.bf16.mxu1 %v1751_v4 }
 0x506   :  { %v496_v49 = vpop.f32.mrb[2].mxu1 }
 0x507   :  { %v503_v50 = vrot.slane %v496_v49, 4  ;;  %v498_v51 = vpop.f32.mrb[3].mxu1  ;;  %v1888_v49 = vadd.f32 %v1823_v13, %v1802_v45 }
 0x508   :  { %v504_v52 = vrot.slane %v498_v51, 4 }
 0x509   :  { %v507_v53 = vadd.f32 %v503_v50, %v1805_v47 }
 0x50a   :  { %v508_v54 = vadd.f32 %v504_v52, %v1808_v48 }
 0x50b   :  { %v1212_v55 = vmul.f32 -1.442695, %v507_v53 }
 0x50c   :  { %v1213_v56 = vmul.f32 -1.442695, %v508_v54 }
 0x50d   :  { %1444 = vpow2.f32 %v1212_v55 }
 0x50e   :  { %1446 = vpow2.f32 %v1213_v56 }
 0x50f   :  { %1448 = vtanh.f32 %v508_v54 }
 0x517   :  { %v1445_v57 = vpop.eup %1444 }
 0x518   :  { %v1447_v58 = vpop.eup %1446  ;;  %v517_v59 = vadd.f32 1.0, %v1445_v57 }
 0x519   :  { %v518_v61 = vadd.f32 1.0, %v1447_v58  ;;  %v1449_v62 = vpop.eup %1448 }
 0x51a   :  { %1450 = vrcp.f32 %v517_v59 }
 0x51b   :  { %1452 = vrcp.f32 %v518_v61 }
 0x524   :  { %v1451_v1 = vpop.eup %1450 }
 0x525   :  { %v1453_v2 = vpop.eup %1452  ;;  %v528_v3 = vmul.f32 %v1451_v1, %v526_v63 }
 0x526   :  { %v524_v5 = vsel %vm207_vm1, %v1449_v62, %v1453_v2 }
 0x527   :  { %v529_v6 = vmul.f32 %v1451_v1, %v524_v5 }
 0x529   :  { %531 = vrot.lane.b32.xlu0 %v529_v6, %s1643_s3 }
 0x59b   :  { %v532_v7 = vpop.permute.xlu0 %531 }
 0x59c   :  { %v534_v10 = vadd.f32 %v532_v7, %v528_v3 }
 0x59e   :  { %1454 = vtanh.f32 %v534_v10  ;;  %v639_v31 = vrot.slane %v534_v10, 6 }
 0x5a8   :  { %v1455_v11 = vpop.eup %1454 }
 0x5a9   :  { %v536_v14 = vmul.f32 %v1455_v11, %v524_v5 }
 0x5ab   :  { %v538_v15 = vrot.slane %v536_v14, 4 }
 0x5ad   :  { %539 = vrot.lane.b32.xlu1 %v538_v15, %s1643_s3 }
 0x61f   :  { %v540_v16 = vpop.permute.xlu1 %539 }
 0x620   :  { %1214 = vmatmul.mubr.msk.f32.vlgmr.msra.gmra.mrb[6].mxu0 %vm210_vm2, %v540_v16 }
 0x621   :  { %1350 = vmatpush1.bf16.msra.mxu0 %v1753_v8  ;;  %826 = vmatprep.mubr.f32.mxu0 %v1642_v0 }
 0x622   :  { %1352 = vmatprep.subr.bf16.mxu0 %v1755_v9 }
 0x625   :  { %1354 = vmatpush1.bf16.msra.mxu0 %v1759_v17 }
 0x626   :  { %1356 = vmatprep.subr.bf16.mxu0 %v1762_v22 }
 0x629   :  { %1358 = vmatpush1.bf16.msra.mxu0 %v1765_v32 }
 0x62a   :  { %1360 = vmatprep.subr.bf16.mxu0 %v1768_v33 }
 0x62d   :  { %1362 = vmatpush1.bf16.msra.mxu0 %v1772_v37 }
 0x62e   :  { %1380 = vmatprep.subr.bf16.mxu0 %v1751_v4 }
 0x6f3   :  { %v609_v18 = vpop.f32.mrb[6].mxu0 }
 0x6f4   :  { %v616_v19 = vrot.slane %v609_v18, 2  ;;  %v611_v20 = vpop.f32.mrb[7].mxu0 }
 0x6f5   :  { %v617_v21 = vrot.slane %v611_v20, 2 }
 0x6f6   :  { %v620_v23 = vadd.f32 %v616_v19, %v1805_v47 }
 0x6f7   :  { %v621_v24 = vadd.f32 %v617_v21, %v1808_v48 }
 0x6f8   :  { %v1215_v25 = vmul.f32 -1.442695, %v620_v23 }
 0x6f9   :  { %v1216_v26 = vmul.f32 -1.442695, %v621_v24 }
 0x6fa   :  { %1456 = vpow2.f32 %v1215_v25 }
 0x6fb   :  { %1458 = vpow2.f32 %v1216_v26 }
 0x6fc   :  { %1460 = vtanh.f32 %v621_v24 }
 0x704   :  { %v1457_v27 = vpop.eup %1456 }
 0x705   :  { %v1459_v28 = vpop.eup %1458  ;;  %v630_v29 = vadd.f32 1.0, %v1457_v27 }
 0x706   :  { %v631_v30 = vadd.f32 1.0, %v1459_v28  ;;  %v1461_v4 = vpop.eup %1460 }
 0x707   :  { %1462 = vrcp.f32 %v630_v29 }
 0x708   :  { %1464 = vrcp.f32 %v631_v30 }
 0x711   :  { %v1463_v34 = vpop.eup %1462 }
 0x712   :  { %v1465_v35 = vpop.eup %1464  ;;  %v641_v36 = vmul.f32 %v1463_v34, %v639_v31 }
 0x713   :  { %v637_v47 = vsel %vm207_vm1, %v1461_v4, %v1465_v35 }
 0x714   :  { %v642_v48 = vmul.f32 %v1463_v34, %v637_v47 }
 0x716   :  { %644 = vrot.lane.b32.xlu0 %v642_v48, %s1643_s3 }
 0x788   :  { %v645_v38 = vpop.permute.xlu0 %644 }
 0x789   :  { %v647_v39 = vadd.f32 %v645_v38, %v641_v36 }
 0x78b   :  { %1466 = vtanh.f32 %v647_v39  ;;  %v746_v45 = vrot.slane %v647_v39, 6 }
 0x795   :  { %v1467_v40 = vpop.eup %1466 }
 0x796   :  { %v649_v41 = vmul.f32 %v1467_v40, %v637_v47 }
 0x798   :  { %v651_v42 = vrot.slane %v649_v41, 6 }
 0x79a   :  { %652 = vrot.lane.b32.xlu1 %v651_v42, %s1643_s3 }
 0x80c   :  { %v653_v44 = vpop.permute.xlu1 %652 }
 0x80d   :  { %1217 = vmatmul.mubr.msk.f32.vlgmr.msra.gmra.mrb[4].mxu1 %vm210_vm2, %v653_v44 }
 0x80e   :  { %1366 = vmatpush1.bf16.msra.mxu1 %v1753_v8  ;;  %939 = vmatprep.mubr.f32.mxu1 %v1642_v0 }
 0x80f   :  { %1368 = vmatprep.subr.bf16.mxu1 %v1755_v9 }
 0x812   :  { %1370 = vmatpush1.bf16.msra.mxu1 %v1759_v17 }
 0x813   :  { %1372 = vmatprep.subr.bf16.mxu1 %v1762_v22 }
 0x816   :  { %1374 = vmatpush1.bf16.msra.mxu1 %v1765_v32 }
 0x817   :  { %1376 = vmatprep.subr.bf16.mxu1 %v1768_v33 }
 0x81a   :  { %1378 = vmatpush1.bf16.msra.mxu1 %v1772_v37 }
 0x8e0   :  { %v722_v50 = vpop.f32.mrb[4].mxu1 }
 0x8e1   :  { %v727_v51 = vadd.f32 %v722_v50, %v1884_v46  ;;  %v724_v52 = vpop.f32.mrb[5].mxu1 }
 0x8e2   :  { %v728_v53 = vadd.f32 %v724_v52, %v1888_v49 }
 0x8e3   :  { %v1218_v54 = vmul.f32 -1.442695, %v727_v51 }
 0x8e4   :  { %v1219_v55 = vmul.f32 -1.442695, %v728_v53 }
 0x8e5   :  { %1468 = vpow2.f32 %v1218_v54 }
 0x8e6   :  { %1470 = vpow2.f32 %v1219_v55 }
 0x8e7   :  { %1472 = vtanh.f32 %v728_v53 }
 0x8ef   :  { %v1469_v56 = vpop.eup %1468 }
 0x8f0   :  { %v1471_v57 = vpop.eup %1470  ;;  %v737_v58 = vadd.f32 1.0, %v1469_v56 }
 0x8f1   :  { %v738_v43 = vadd.f32 1.0, %v1471_v57  ;;  %v1473_v12 = vpop.eup %1472 }
 0x8f2   :  { %1474 = vrcp.f32 %v737_v58 }
 0x8f3   :  { %1476 = vrcp.f32 %v738_v43 }
 0x8fc   :  { %v1475_v13 = vpop.eup %1474 }
 0x8fd   :  { %v1477_v59 = vpop.eup %1476  ;;  %v748_v61 = vmul.f32 %v1475_v13, %v746_v45 }
 0x8fe   :  { %v744_v62 = vsel %vm207_vm1, %v1473_v12, %v1477_v59 }
 0x8ff   :  { %v749_v63 = vmul.f32 %v1475_v13, %v744_v62 }
 0x901   :  { %751 = vrot.lane.b32.xlu0 %v749_v63, %s1643_s3 }
 0x973   :  { %v752_v1 = vpop.permute.xlu0 %751 }
 0x974   :  { %v754_v2 = vadd.f32 %v752_v1, %v748_v61 }
 0x976   :  { %1478 = vtanh.f32 %v754_v2 }
 0x980   :  { %v1479_v3 = vpop.eup %1478 }
 0x981   :  { %v756_v5 = vmul.f32 %v1479_v3, %v744_v62 }
 0x983   :  { %758 = vrot.lane.b32.xlu1 %v756_v5, %s1643_s3 }
 0x9f5   :  { %v759_v6 = vpop.permute.xlu1 %758 }
 0x9f6   :  { %1220 = vmatmul.mubr.msk.f32.vlgmr.msra.gmra.mrb[8].mxu0 %vm210_vm2, %v759_v6 }
 0x9f7   :  { %1382 = vmatpush1.bf16.msra.mxu0 %v1753_v8  ;;  %1052 = vmatprep.mubr.f32.mxu0 %v1642_v0 }
 0x9f8   :  { %1384 = vmatprep.subr.bf16.mxu0 %v1755_v9 }
 0x9fb   :  { %1386 = vmatpush1.bf16.msra.mxu0 %v1759_v17 }
 0x9fc   :  { %1388 = vmatprep.subr.bf16.mxu0 %v1762_v22 }
 0x9ff   :  { %1390 = vmatpush1.bf16.msra.mxu0 %v1765_v32 }
 0xa00   :  { %1392 = vmatprep.subr.bf16.mxu0 %v1768_v33 }
 0xa03   :  { %1394 = vmatpush1.bf16.msra.mxu0 %v1772_v37  ;;  %v858_v37 = vrot.slane %v754_v2, 6 }
 0xac9   :  { %v828_v7 = vpop.f32.mrb[8].mxu0 }
 0xaca   :  { %v835_v10 = vrot.slane %v828_v7, 6  ;;  %v830_v11 = vpop.f32.mrb[9].mxu0 }
 0xacb   :  { %v836_v14 = vrot.slane %v830_v11, 6 }
 0xacc   :  { %v839_v8 = vadd.f32 %v835_v10, %v1884_v46 }
 0xacd   :  { %v840_v15 = vadd.f32 %v836_v14, %v1888_v49 }
 0xace   :  { %v1221_v16 = vmul.f32 -1.442695, %v839_v8 }
 0xacf   :  { %v1222_v9 = vmul.f32 -1.442695, %v840_v15 }
 0xad0   :  { %1480 = vpow2.f32 %v1221_v16 }
 0xad1   :  { %1482 = vpow2.f32 %v1222_v9  ;;  %v1095_v9 = vld [vmem:[#allocation8] sm:$0xff] }
 0xad2   :  { %1484 = vtanh.f32 %v840_v15 }
 0xada   :  { %v1481_v17 = vpop.eup %1480 }
 0xadb   :  { %v1483_v22 = vpop.eup %1482  ;;  %v849_v18 = vadd.f32 1.0, %v1481_v17  ;;  %v1096_v17 = vld [vmem:[#allocation8 + $0x8] sm:$0xff] }
 0xadc   :  { %v850_v32 = vadd.f32 1.0, %v1483_v22  ;;  %v1485_v33 = vpop.eup %1484  ;;  %v1097_v22 = vld [vmem:[#allocation8 + $0x10] sm:$0xff] }
 0xadd   :  { %1486 = vrcp.f32 %v849_v18  ;;  %v1644_v18 = vmov 0.0|0.0  }
 0xade   :  { %1488 = vrcp.f32 %v850_v32  ;;  %1395 = vmatprep.subr.bf16.mxu1 %v1644_v18  ;;  %v1396_v32 = vpack.c.bf16 %v1096_v17, %v1095_v9 }
 0xae7   :  { %v1487_v19 = vpop.eup %1486 }
 0xae8   :  { %v1489_v20 = vpop.eup %1488  ;;  %v860_v21 = vmul.f32 %v1487_v19, %v858_v37 }
 0xae9   :  { %v856_v23 = vsel %vm207_vm1, %v1485_v33, %v1489_v20  ;;  %v1098_v33 = vld [vmem:[#allocation8 + $0x18] sm:$0xff]  ;;  %v1100_v20 = vld [vmem:[#allocation8 + $0x28] sm:$0xff] }
 0xaea   :  { %v861_v24 = vmul.f32 %v1487_v19, %v856_v23  ;;  %v1399_v37 = vpack.c.bf16 %v1098_v33, %v1097_v22  ;;  %v1099_v19 = vld [vmem:[#allocation8 + $0x20] sm:$0xff] }
 0xaeb   :  { %v1402_v60 = vpack.c.bf16 %v1100_v20, %v1099_v19 }
 0xaec   :  { %863 = vrot.lane.b32.xlu0 %v861_v24, %s1643_s3 }
 0xb5e   :  { %v864_v25 = vpop.permute.xlu0 %863 }
 0xb5f   :  { %v866_v26 = vadd.f32 %v864_v25, %v860_v21  ;;  %v1101_v21 = vld [vmem:[#allocation8 + $0x30] sm:$0xff] }
 0xb61   :  { %1490 = vtanh.f32 %v866_v26  ;;  %v971_v50 = vrot.slane %v866_v26, 6 }
 0xb6b   :  { %v1491_v27 = vpop.eup %1490 }
 0xb6c   :  { %v868_v28 = vmul.f32 %v1491_v27, %v856_v23  ;;  %v1102_v23 = vld [vmem:[#allocation8 + $0x38] sm:$0xff] }
 0xb6d   :  { %v1405_v24 = vpack.c.bf16 %v1102_v23, %v1101_v21 }
 0xb6e   :  { %v870_v29 = vrot.slane %v868_v28, 2 }
 0xb70   :  { %871 = vrot.lane.b32.xlu1 %v870_v29, %s1643_s3 }
 0xbe2   :  { %v872_v30 = vpop.permute.xlu1 %871 }
 0xbe3   :  { %1223 = vmatmul.mubr.msk.f32.vlgmr.msra.gmra.mrb[6].mxu1 %vm210_vm2, %v872_v30  ;;  %v1229_v30 = vld [vmem:[%s1947_s5] ss:$0 sm:$0xff] }
 0xbe4   :  { %1256 = vmatprep.mubr.msk.f32.mxu1 %vm1645_vm3, %v1642_v0  ;;  %1397 = vmatpush3.bf16.msra.mxu1 %v1396_v32 }
 0xbe5   :  { %1398 = vmatprep.subr.bf16.mxu1 %v1644_v18 }
 0xbe8   :  { %1400 = vmatpush3.bf16.msra.mxu1 %v1399_v37 }
 0xbe9   :  { %1401 = vmatprep.subr.bf16.mxu1 %v1644_v18 }
 0xbec   :  { %1403 = vmatpush3.bf16.msra.mxu1 %v1402_v60 }
 0xbed   :  { %1404 = vmatprep.subr.bf16.mxu1 %v1644_v18 }
 0xbf0   :  { %1406 = vmatpush3.bf16.msra.mxu1 %v1405_v24 }
 0xcb6   :  { %v941_v4 = vpop.f32.mrb[6].mxu1 }
 0xcb7   :  { %v948_v31 = vrot.slane %v941_v4, 4  ;;  %v943_v34 = vpop.f32.mrb[7].mxu1 }
 0xcb8   :  { %v949_v35 = vrot.slane %v943_v34, 4 }
 0xcb9   :  { %v952_v36 = vadd.f32 %v948_v31, %v1884_v46 }
 0xcba   :  { %v953_v47 = vadd.f32 %v949_v35, %v1888_v49 }
 0xcbb   :  { %v1224_v48 = vmul.f32 -1.442695, %v952_v36 }
 0xcbc   :  { %v1225_v38 = vmul.f32 -1.442695, %v953_v47 }
 0xcbd   :  { %1492 = vpow2.f32 %v1224_v48 }
 0xcbe   :  { %1494 = vpow2.f32 %v1225_v38 }
 0xcbf   :  { %1496 = vtanh.f32 %v953_v47 }
 0xcc7   :  { %v1493_v39 = vpop.eup %1492 }
 0xcc8   :  { %v1495_v40 = vpop.eup %1494  ;;  %v962_v41 = vadd.f32 1.0, %v1493_v39 }
 0xcc9   :  { %v963_v42 = vadd.f32 1.0, %v1495_v40  ;;  %v1497_v44 = vpop.eup %1496 }
 0xcca   :  { %1498 = vrcp.f32 %v962_v41 }
 0xccb   :  { %1500 = vrcp.f32 %v963_v42 }
 0xcd4   :  { %v1499_v51 = vpop.eup %1498 }
 0xcd5   :  { %v1501_v52 = vpop.eup %1500  ;;  %v973_v53 = vmul.f32 %v1499_v51, %v971_v50 }
 0xcd6   :  { %v969_v54 = vsel %vm207_vm1, %v1497_v44, %v1501_v52 }
 0xcd7   :  { %v974_v55 = vmul.f32 %v1499_v51, %v969_v54 }
 0xcd9   :  { %976 = vrot.lane.b32.xlu0 %v974_v55, %s1643_s3 }
 0xd4b   :  { %v977_v56 = vpop.permute.xlu0 %976 }
 0xd4c   :  { %v979_v57 = vadd.f32 %v977_v56, %v973_v53 }
 0xd4e   :  { %1502 = vtanh.f32 %v979_v57  ;;  %v1084_v14 = vrot.slane %v979_v57, 6 }
 0xd58   :  { %v1503_v58 = vpop.eup %1502 }
 0xd59   :  { %v981_v43 = vmul.f32 %v1503_v58, %v969_v54 }
 0xd5b   :  { %v983_v12 = vrot.slane %v981_v43, 4 }
 0xd5d   :  { %984 = vrot.lane.b32.xlu1 %v983_v12, %s1643_s3 }
 0xdcf   :  { %v985_v45 = vpop.permute.xlu1 %984 }
 0xdd0   :  { %1226 = vmatmul.mubr.msk.f32.vlgmr.msra.gmra.mrb[10].mxu0 %vm210_vm2, %v985_v45 }
 0xea3   :  { %v1054_v13 = vpop.f32.mrb[10].mxu0 }
 0xea4   :  { %v1061_v59 = vrot.slane %v1054_v13, 2  ;;  %v1056_v61 = vpop.f32.mrb[11].mxu0 }
 0xea5   :  { %v1062_v62 = vrot.slane %v1056_v61, 2 }
 0xea6   :  { %v1065_v63 = vadd.f32 %v1061_v59, %v1884_v46 }
 0xea7   :  { %v1066_v1 = vadd.f32 %v1062_v62, %v1888_v49 }
 0xea8   :  { %v1227_v2 = vmul.f32 -1.442695, %v1065_v63 }
 0xea9   :  { %v1228_v3 = vmul.f32 -1.442695, %v1066_v1 }
 0xeaa   :  { %1504 = vpow2.f32 %v1227_v2 }
 0xeab   :  { %1506 = vpow2.f32 %v1228_v3 }
 0xeac   :  { %1508 = vtanh.f32 %v1066_v1 }
 0xeb4   :  { %v1505_v5 = vpop.eup %1504 }
 0xeb5   :  { %v1507_v6 = vpop.eup %1506  ;;  %v1075_v7 = vadd.f32 1.0, %v1505_v5 }
 0xeb6   :  { %v1076_v10 = vadd.f32 1.0, %v1507_v6  ;;  %v1509_v11 = vpop.eup %1508 }
 0xeb7   :  { %1510 = vrcp.f32 %v1075_v7 }
 0xeb8   :  { %1512 = vrcp.f32 %v1076_v10 }
 0xec1   :  { %v1511_v8 = vpop.eup %1510 }
 0xec2   :  { %v1513_v15 = vpop.eup %1512  ;;  %v1086_v16 = vmul.f32 %v1511_v8, %v1084_v14 }
 0xec3   :  { %v1082_v46 = vsel %vm207_vm1, %v1509_v11, %v1513_v15 }
 0xec4   :  { %v1087_v49 = vmul.f32 %v1511_v8, %v1082_v46 }
 0xec6   :  { %1089 = vrot.lane.b32.xlu0 %v1087_v49, %s1643_s3 }
 0xf38   :  { %v1090_v25 = vpop.permute.xlu0 %1089 }
 0xf39   :  { %v1092_v26 = vadd.f32 %v1090_v25, %v1086_v16 }
 0xf3b   :  { %1514 = vtanh.f32 %v1092_v26 }
 0xf45   :  { %v1515_v27 = vpop.eup %1514 }
 0xf46   :  { %v1094_v28 = vmul.f32 %v1515_v27, %v1082_v46 }
 0xf48   :  { %v1111_v0 = vrot.slane %v1094_v28, 6 }
 0xf4a   :  { %1112 = vrot.lane.b32.xlu1 %v1111_v0, %s1643_s3 }
 0xfbc   :  { %v1113_v29 = vpop.permute.xlu1 %1112 }
 0xfbd   :  { %1257 = vmatmul.mubr.msk.f32.vlgmr.msra.gmra.mrb[8].mxu1 %vm210_vm2, %v1113_v29 }
0x1090   :  { %v1182_v4 = vpop.f32.mrb[8].mxu1 }
0x1091   :  { %v1183_v31 = vadd.f32 %v1229_v30, %v1182_v4  ;;  %v1258_v34 = vpop.f32.mrb[9].mxu1 }
0x1093   :  { %1186 = vst [vmem:[#allocation10] sm:$0x3] %v1183_v31 }
0x1094   :  { %1615 = shalt.err (!%p1612_p8)
}
0x1095   :  { %s1616_s29 = scalar_lea.hbm %s1948_s6, 32 }
0x1096   :  { %p1617_p9 = scmp.ne.s32.totalorder %s1948_s6, %s1616_s29  ;;  %p1620_p10 = scmp.lt.u32.totalorder %s1616_s29, %s1948_s6 }
0x1098   :  { %p1622_p11 = pnand %p1620_p10, %p1617_p9 }
0x109a   :  { %1625 = shalt.err (!%p1622_p11)
}
0x109b   :  { %1196 = dma.vmem_to_hbm [thread:$0]  %s1194_s25, 32, %s1948_s6, [#allocation4]  }
0x109c   :  { %1632 = dma.done.wait [#allocation4], 32  }
0x109d   :  { %1633 = vsyncadd [#allocation4], 4294967264 }
0x109e   :  { %1200 = vsyncpa [#allocation3], 1 }
0x109f   :  { %1201 = vsyncpa [#allocation6], 1 }
0x10a0   :  { %1202 = vsyncpa [#allocation9], 1 }
0x10a1   :  { %1203 = vsyncpa [#allocation4], 1 }

</bundles_post_ra>
